<compile_context>
chip_gen: v7x
topology: tpu7x:2x2x1
jax: 0.10.0
libtpu: 0.0.40
codegen_flags: <defaults>
</compile_context>

<pallas_src>
import jax
import jax.numpy as jnp
from jax.experimental import pallas as pl
from jax.experimental.pallas import tpu as pltpu

LANES = 128
MAX_BLOCK_BYTES = 8 * 1024 * 1024      # per-operand block target (~8 MiB)
VMEM_LIMIT_BYTES = 48 << 20            # <= 64 MiB physical on every TPU gen


def _make_kernel(spiking: bool):
    """alpha rides in SMEM as a (1,) scalar so runtime alpha changes do not
    retrace / recompile the kernel."""

    def kernel(alpha_ref, x_ref, o_ref):
        if spiking:
            # Heaviside step, x >= 0 convention.
            o_ref[...] = (x_ref[...] >= 0).astype(o_ref.dtype)
        else:
            # sigmoid(a*x) = 0.5 * (1 + tanh(0.5*a*x)); single EUP push per
            # element, f32 intermediates, no exp overflow for large |a*x|.
            xf = x_ref[...].astype(jnp.float32)
            a = alpha_ref[0]
            o_ref[...] = (0.5 * (1.0 + jnp.tanh(0.5 * a * xf))).astype(o_ref.dtype)

    return kernel


def _num_tensorcores() -> int:
    """2 TensorCores per chip on v7x; 1 on v5e/v6e. Best-effort detection."""
    try:
        kind = jax.devices()[0].device_kind.lower()
        if "v7" in kind:
            return 2
    except Exception:
        pass
    return 1


def _round_up(n: int, m: int) -> int:
    return -(-n // m) * m


def _pick_block_rows(rows: int, row_bytes: int, mult: int, num_tc: int) -> int:
    """Row count per block: biggest block that fits the per-operand budget,
    multiple of `mult` (sublane packing), even grid on 2-TC chips."""
    max_rows = max(mult, (MAX_BLOCK_BYTES // row_bytes) // mult * mult)
    if rows <= max_rows:
        if num_tc >= 2 and rows >= 2 * mult:
            # Split medium inputs in two so both TensorCores get work.
            return min(rows, _round_up(-(-rows // 2), mult))
        return rows                      # single full-extent block (always legal)
    block = max_rows
    g = -(-rows // block)
    if num_tc >= 2 and g % 2 == 1:       # prefer an even grid -> balanced megacore
        block = _round_up(-(-rows // (g + 1)), mult)
    return block


def _run(x2d, alpha, spiking, out_dtype, mult, num_tc):
    rows, cols = x2d.shape
    row_bytes = cols * max(jnp.dtype(x2d.dtype).itemsize, jnp.dtype(out_dtype).itemsize)
    block_rows = _pick_block_rows(rows, row_bytes, mult, num_tc)
    grid = (pl.cdiv(rows, block_rows),)   # cdiv: partial last block is masked

    alpha_arr = jnp.full((1,), alpha, dtype=jnp.float32)

    return pl.pallas_call(
        _make_kernel(bool(spiking)),
        out_shape=jax.ShapeDtypeStruct((rows, cols), out_dtype),
        grid_spec=pltpu.PrefetchScalarGridSpec(
            num_scalar_prefetch=0,
            grid=grid,
            in_specs=[
                pl.BlockSpec(memory_space=pltpu.MemorySpace.SMEM),   # alpha scalar
                pl.BlockSpec((block_rows, cols), lambda i: (i, 0)),
            ],
            out_specs=pl.BlockSpec((block_rows, cols), lambda i: (i, 0)),
        ),
        compiler_params=pltpu.CompilerParams(
            dimension_semantics=("parallel",),
            vmem_limit_bytes=VMEM_LIMIT_BYTES,
        ),
    )(alpha_arr, x2d)


def _padded_forward(x, alpha, spiking, out_dtype, mult, num_tc):
    # Fallback for pathological shapes (huge unaligned last dim): pay one pad
    # copy to get a lane-dense layout.
    total = x.size
    padded = pl.cdiv(total, LANES) * LANES
    x_flat = jnp.ravel(x)
    if padded != total:
        x_flat = jnp.concatenate([x_flat, jnp.zeros((padded - total,), x.dtype)])
    out2d = _run(x_flat.reshape(-1, LANES), alpha, spiking, out_dtype, mult, num_tc)
    return out2d.reshape(-1)[:total].reshape(x.shape)


def surrogate_forward(x: jnp.ndarray, alpha, spiking: bool = True, out_dtype=None):
    """Forward of SurrogateFunctionBase; elementwise over any shape.

    out_dtype: optional narrower output dtype (e.g. bf16 for the {0,1} spike
    output) to cut HBM writeback traffic -- opt-in, default matches input.
    """
    orig_shape = x.shape
    out_dtype = jnp.dtype(out_dtype) if out_dtype is not None else x.dtype
    total = x.size
    if total == 0:
        return jnp.zeros(orig_shape, out_dtype)

    in_size = jnp.dtype(x.dtype).itemsize
    out_size = jnp.dtype(out_dtype).itemsize
    # Sublane packing multiple: 8 for 32-bit, 16 for 16-bit, 32 for 8-bit.
    mult = max(8, 32 // min(in_size, out_size))
    num_tc = _num_tensorcores()

    if total % LANES == 0:
        # Common case: zero-copy reshape to a lane-dense [rows, 128] slab.
        x2d = x.reshape(-1, LANES)
    else:
        # Unaligned total: keep the last dim as the lane dim (zero-copy,
        # full-extent last-dim block; partial lanes handled by masking).
        cols = x.shape[-1] if x.ndim >= 1 else 1
        if cols * max(in_size, out_size) * mult > MAX_BLOCK_BYTES:
            # TODO(synk): huge unaligned rows -- fall back to one pad copy.
            return _padded_forward(x, alpha, spiking, out_dtype, mult, num_tc)
        x2d = x.reshape(-1, cols)

    out2d = _run(x2d, alpha, spiking, out_dtype, mult, num_tc)
    return out2d.reshape(orig_shape)


class SurrogateFunctionBase:
    """JAX/Pallas port of the PyTorch SurrogateFunctionBase module."""

    def __init__(self, alpha, spiking=True):
        self.alpha = alpha
        self.spiking = spiking

    def set_spiking_mode(self, spiking: bool):
        self.spiking = spiking

    def extra_repr(self):
        return f"alpha={self.alpha}, spiking={self.spiking}"

    def __call__(self, x):
        return surrogate_forward(x, self.alpha, self.spiking)


if __name__ == "__main__":
    key = jax.random.PRNGKey(0)
    # Small NCHW input consistent with an elementwise activation module.
    x = jax.random.normal(key, (2, 4, 16, 16), dtype=jnp.float32)

    mod = SurrogateFunctionBase(alpha=2.0, spiking=True)
    y_spike = jax.block_until_ready(mod(x))

    mod.set_spiking_mode(False)
    y_prim = jax.block_until_ready(mod(x))

    assert y_spike.shape == x.shape and y_prim.shape == x.shape
    assert jnp.allclose(y_spike, (x >= 0).astype(jnp.float32))
    assert jnp.allclose(y_prim, jax.nn.sigmoid(2.0 * x), atol=1e-3, rtol=1e-3)

    # Unaligned total: exercises the zero-copy last-dim (masked-lane) path.
    x2 = jax.random.normal(jax.random.PRNGKey(1), (3, 5, 33, 17), jnp.float32)
    mod2 = SurrogateFunctionBase(alpha=1.5, spiking=False)
    y2 = jax.block_until_ready(mod2(x2))
    assert jnp.allclose(y2, jax.nn.sigmoid(1.5 * x2), atol=1e-3, rtol=1e-3)
    mod2.set_spiking_mode(True)
    y2s = jax.block_until_ready(mod2(x2))
    assert jnp.allclose(y2s, (x2 >= 0).astype(jnp.float32))

    print("KERNEL_OK")
</pallas_src>

<mosaic_0001>
module attributes {stable_mosaic.version = 11 : i64} {
  func.func @kernel(%arg0: i32, %arg1: memref<1xf32, #tpu.memory_space<smem>>, %arg2: memref<16x128xf32, #tpu.memory_space<vmem>>, %arg3: memref<16x128xf32, #tpu.memory_space<vmem>>) attributes {dimension_semantics = [#tpu.dimension_semantics<parallel>], iteration_bounds = array<i64: 1>, scalar_prefetch = 0 : i64, scratch_operands = 0 : i64, tpu.core_type = #tpu.core_type<tc>, window_params = [{transform_indices = @transform_0, window_bounds = array<i64: 1>}, {transform_indices = @transform_1, window_bounds = array<i64: 16, 128>}, {transform_indices = @transform_2, window_bounds = array<i64: 16, 128>}]} {
    %c0 = arith.constant 0 : index
    %c0_0 = arith.constant 0 : index
    %0 = vector.load %arg2[%c0, %c0_0] : memref<16x128xf32, #tpu.memory_space<vmem>>, vector<16x128xf32>
    %cst = arith.constant 0.000000e+00 : f32
    %1 = vector.broadcast %cst : f32 to vector<16x128xf32>
    %2 = arith.cmpf oge, %0, %1 : vector<16x128xf32>
    %3 = arith.extui %2 : vector<16x128xi1> to vector<16x128xi32>
    %4 = arith.sitofp %3 : vector<16x128xi32> to vector<16x128xf32>
    %c0_1 = arith.constant 0 : index
    %c0_2 = arith.constant 0 : index
    %5 = vector.load %arg3[%c0_1, %c0_2] : memref<16x128xf32, #tpu.memory_space<vmem>>, vector<16x128xf32>
    tpu.vector_store %arg3[%c0_1, %c0_2], %4 {strides = array<i32>} : memref<16x128xf32, #tpu.memory_space<vmem>>, vector<16x128xf32>,
    return
  }
  func.func @transform_0(%arg0: i32) -> i32 {
    %c0_i32 = arith.constant 0 : i32
    %c0_i32_0 = arith.constant 0 : i32
    return %c0_i32 : i32
  }
  func.func @transform_1(%arg0: i32) -> (i32, i32) {
    %c0_i32 = arith.constant 0 : i32
    %c0_i32_0 = arith.constant 0 : i32
    return %arg0, %c0_i32 : i32, i32
  }
  func.func @transform_2(%arg0: i32) -> (i32, i32) {
    %c0_i32 = arith.constant 0 : i32
    %c0_i32_0 = arith.constant 0 : i32
    return %arg0, %c0_i32 : i32, i32
  }
}

</mosaic_0001>

<bundles_post_ra>
// kernel: tpu_custom_call.1
= control target key start
LH: loop header
LB: loop body
LE: loop exit
PB: predicated region body
PF: predicated region fallthrough
CT: control target
= control target key end

     0   :  { %8 = vsyncpa [#allocation4], 0  ;;  %s159_s0 = inlined_call_operand.<no memory space> [shape: f32[1], index: 0, kind: input, shape index: {}]   ;;  %s160_s1 = inlined_call_operand.hbm [shape: f32[16,128], index: 1, kind: input, shape index: {}]   ;;  %s161_s2 = inlined_call_operand.hbm [shape: f32[16,128], index: 2, kind: output, shape index: {}]  }
   0x1   :  { %9 = vsyncpa [#allocation5], 0  ;;  %s109_s9 = smov [#allocation3]   ;;  %s61_s13 = scalar_lea.hbm %s160_s1, 256 }
   0x2   :  { %s17_s10 = sshll.u32 %s109_s9, 4  ;;  %p62_p0 = scmp.ne.s32.totalorder %s160_s1, %s61_s13  ;;  %s18_s10 = int_to_ptr.vmem [resolvable:$true] %s17_s10 }
   0x3   :  { %p65_p1 = scmp.lt.u32.totalorder %s61_s13, %s160_s1 }
   0x5   :  { %p67_p2 = pnand %p65_p1, %p62_p0 }
   0x7   :  { %70 = shalt.err (!%p67_p2)
}
   0x8   :  { %s71_s17 = scalar_lea.vmem %s18_s10, 256  ;;  %p76_p4 = scmp.lt.s32.totalorder %s18_s10, %s18_s10 }
   0x9   :  { %p72_p3 = scmp.ne.s32.totalorder %s18_s10, %s71_s17  ;;  %p77_p5 = scmp.lt.s32.totalorder %s71_s17, %s71_s17 }
   0xb   :  { %p78_p6 = por %p77_p5, %p76_p4 }
   0xd   :  { %p79_p7 = pnand %p78_p6, %p72_p3 }
   0xf   :  { %82 = shalt.err (!%p79_p7)
}
  0x10   :  { %s110_s18 = smov 128   ;;  %s111_s19 = smov 8  }
  0x11   :  { %23 = dma.hbm_to_vmem [thread:$0]  %s160_s1, 256, %s18_s10, [#allocation4], %s110_s18, %s110_s18, %s111_s19  }
  0x12   :  { %105 = dma.done.wait [#allocation4], 256  }
  0x13   :  { %106 = vsyncadd [#allocation4], 4294967040  ;;  %s112_s22 = smov [#allocation6]   ;;  %v27_v0 = vld [vmem:[#allocation3] sm:$0xff]  ;;  %v28_v1 = vld [vmem:[#allocation3 + $0x8] sm:$0xff]  ;;  %v113_v2 = vmov 0.0  }
  0x14   :  { %s42_s23 = sshll.u32 %s112_s22, 4  ;;  %vm29_vm0 = vcmp.ge.f32.partialorder %v27_v0, 0.0  ;;  %vm30_vm1 = vcmp.ge.f32.partialorder %v28_v1, 0.0  ;;  %s43_s23 = int_to_ptr.vmem [resolvable:$true] %s42_s23 }
  0x15   :  { %v54_v3 = vsel %vm29_vm0, 1.0, %v113_v2  ;;  %v55_v4 = vsel %vm30_vm1, 1.0, %v113_v2  ;;  %s83_s24 = scalar_lea.vmem %s43_s23, 256  ;;  %p88_p9 = scmp.lt.s32.totalorder %s43_s23, %s43_s23 }
  0x16   :  { %35 = vst [vmem:[#allocation6] sm:$0xff] %v54_v3  ;;  %36 = vst [vmem:[#allocation6 + $0x8] sm:$0xff] %v55_v4  ;;  %p84_p8 = scmp.ne.s32.totalorder %s43_s23, %s83_s24  ;;  %p89_p10 = scmp.lt.s32.totalorder %s83_s24, %s83_s24 }
  0x18   :  { %p90_p11 = por %p89_p10, %p88_p9 }
  0x1a   :  { %p91_p12 = pnand %p90_p11, %p84_p8 }
  0x1c   :  { %94 = shalt.err (!%p91_p12)
}
  0x1d   :  { %s95_s26 = scalar_lea.hbm %s161_s2, 256 }
  0x1e   :  { %p96_p13 = scmp.ne.s32.totalorder %s161_s2, %s95_s26  ;;  %p99_p0 = scmp.lt.u32.totalorder %s95_s26, %s161_s2 }
  0x20   :  { %p101_p1 = pnand %p99_p0, %p96_p13 }
  0x22   :  { %104 = shalt.err (!%p101_p1)
}
  0x23   :  { %48 = dma.vmem_to_hbm [thread:$0]  %s43_s23, 256, %s161_s2, [#allocation5], %s110_s18, %s110_s18, %s111_s19  }
  0x24   :  { %107 = dma.done.wait [#allocation5], 256  }
  0x25   :  { %108 = vsyncadd [#allocation5], 4294967040 }
  0x26   :  { %52 = vsyncpa [#allocation4], 1 }
  0x27   :  { %53 = vsyncpa [#allocation5], 1 }

</bundles_post_ra>
